<compile_context>
chip_gen: v6e
topology: v6e:2x2x1
jax: 0.10.0
libtpu: 0.0.40
codegen_flags: <defaults>
</compile_context>

<pallas_src>
import functools

import jax
import jax.numpy as jnp
import numpy as np
from jax.experimental import pallas as pl
from jax.experimental.pallas import tpu as pltpu


def _cosine_loss_kernel(w_ref, mat_ref, out_ref, pos_acc, neg_acc):
    """One grid step over a (G, C) slab of flattened similarity matrices.

    w_ref   : (2, C)  row 0 = -alpha*pos_mask/(pos_cnt+eps), row 1 = beta*neg_mask/(neg_cnt+eps)
    mat_ref : (G, C)  G flattened matrices (columns = one tile of the B*B entries)
    out_ref : (1, 1)  sum over the group of relu(per-matrix loss)
    pos_acc, neg_acc : (G, 1) f32 scratch, accumulated along the column-tile axis
    """
    c = pl.program_id(1)

    @pl.when(c == 0)
    def _init():
        pos_acc[...] = jnp.zeros_like(pos_acc)
        neg_acc[...] = jnp.zeros_like(neg_acc)

    mat = mat_ref[...]                                   # (G, C) f32
    w = w_ref[...]                                       # (2, C) f32
    pos_acc[...] += jnp.sum(mat * w[0:1, :], axis=-1, keepdims=True)
    neg_acc[...] += jnp.sum(mat * w[1:2, :], axis=-1, keepdims=True)

    @pl.when(c == pl.num_programs(1) - 1)
    def _emit():
        pos = pos_acc[...]
        neg = neg_acc[...]
        # Faithful to the torch.isnan(negative_loss) branch (NaN self-compare).
        loss = jnp.where(neg != neg, pos, pos + neg)
        loss = jnp.maximum(loss, jnp.float32(0.0))
        out_ref[...] = jnp.sum(loss, axis=0, keepdims=True)   # (1, 1)


def _choose_tiling(num_matrices, n, elem_bytes=4, target_bytes=4 << 20):
    """Pick (G rows, C cols) per block for the flattened (M, B*B) slab."""
    if num_matrices * n * elem_bytes <= target_bytes:
        return num_matrices, n                        # whole problem is one block
    if 8 * n * elem_bytes <= target_bytes:
        g = (target_bytes // (n * elem_bytes)) // 8 * 8   # many full matrices / block
        return max(8, g), n
    # A single flattened matrix exceeds the budget -> also tile the B*B axis.
    g = num_matrices if num_matrices < 8 else 8
    c = max(128, (target_bytes // (g * elem_bytes)) // 128 * 128)
    return g, min(c, n)


def cosine_similarity_loss(similarity_matrices, labels, alpha=0.7, beta=0.3,
                           target_block_bytes=4 << 20):
    """similarity_matrices: (M, B, B) or (B, B); labels: (B,) int."""
    sim = jnp.asarray(similarity_matrices, dtype=jnp.float32)
    if sim.ndim == 2:
        sim = sim[None]
    num_matrices, b, b2 = sim.shape
    assert b == b2, "each similarity matrix must be square"
    n = b * b
    eps = jnp.float32(1e-8)

    lab = jnp.asarray(labels, dtype=jnp.int32).reshape(b)
    pos_mask = (lab[:, None] == lab[None, :]).astype(jnp.float32)   # tiny XLA op
    pos_cnt = jnp.sum(pos_mask)
    neg_cnt = jnp.float32(n) - pos_cnt
    # Hoisted divisions: per-matrix losses become pure multiply + reduce.
    w_pos = (-float(alpha) / (pos_cnt + eps)) * pos_mask
    w_neg = (float(beta) / (neg_cnt + eps)) * (1.0 - pos_mask)
    weights = jnp.stack([w_pos.reshape(n), w_neg.reshape(n)], axis=0)  # (2, B*B)

    sim_flat = sim.reshape(num_matrices, n)             # contiguous, lane-dense slab

    g, c = _choose_tiling(num_matrices, n, 4, target_block_bytes)
    m_pad = ((num_matrices + g - 1) // g) * g
    n_pad = ((n + c - 1) // c) * c
    if m_pad != num_matrices or n_pad != n:
        # Zero padding is exact: zero rows -> relu(0)=0; zero cols -> 0 in every sum.
        sim_flat = jnp.pad(sim_flat, ((0, m_pad - num_matrices), (0, n_pad - n)))
        weights = jnp.pad(weights, ((0, 0), (0, n_pad - n)))
    n_groups = m_pad // g
    n_ctiles = n_pad // c

    # Double-buffered matrix block + weight block + slack; keeps v5e's 16-MiB
    # scoped default from binding while staying far under v7x's 64-MiB VMEM.
    vmem_limit = int(min(96 << 20, max(32 << 20, 4 * (g * c + 2 * c) * 4)))

    cost = pl.CostEstimate(
        flops=4 * num_matrices * n,
        transcendentals=0,
        bytes_accessed=(num_matrices * n + 2 * n + n_groups) * 4,
    )

    # TODO(synk): for very large B (n_ctiles > 1) the (2, C) weight tiles are
    # re-fetched once per column tile (~2/G extra HBM traffic); acceptable but
    # could be cached whole in VMEM when 2*B*B*4 fits the per-chip budget.
    group_losses = pl.pallas_call(
        _cosine_loss_kernel,
        out_shape=jax.ShapeDtypeStruct((n_groups, 1), jnp.float32),
        grid_spec=pltpu.PrefetchScalarGridSpec(
            num_scalar_prefetch=0,
            grid=(n_groups, n_ctiles),
            in_specs=[
                pl.BlockSpec((2, c), lambda gi, ci: (0, ci)),   # weights (resident when n_ctiles==1)
                pl.BlockSpec((g, c), lambda gi, ci: (gi, ci)),  # similarity slab tile
            ],
            out_specs=pl.BlockSpec((1, 1), lambda gi, ci: (gi, 0)),
            scratch_shapes=[
                pltpu.VMEM((g, 1), jnp.float32),   # pos accumulator
                pltpu.VMEM((g, 1), jnp.float32),   # neg accumulator
            ],
        ),
        compiler_params=pltpu.CompilerParams(
            dimension_semantics=("parallel", "arbitrary"),
            vmem_limit_bytes=vmem_limit,
        ),
        cost_estimate=cost,
    )(weights, sim_flat)

    return jnp.sum(group_losses) / jnp.float32(num_matrices)


def _reference_loss(similarity_matrices, labels, alpha=0.7, beta=0.3):
    lab = labels[:, None]
    pos_mask = (lab == lab.T).astype(jnp.float32)
    neg_mask = (lab != lab.T).astype(jnp.float32)
    losses = []
    for matrix in similarity_matrices:
        pos_loss = -alpha * jnp.sum(matrix * pos_mask) / (jnp.sum(pos_mask) + 1e-8)
        neg_loss = beta * jnp.sum(matrix * neg_mask) / (jnp.sum(neg_mask) + 1e-8)
        loss = jnp.where(jnp.isnan(neg_loss), pos_loss, pos_loss + neg_loss)
        losses.append(jnp.maximum(loss, 0.0))
    return jnp.mean(jnp.stack(losses))


if __name__ == "__main__":
    key = jax.random.PRNGKey(0)
    k_mats, k_labels = jax.random.split(key)

    num_matrices, batch = 3, 16
    alpha, beta = 0.7, 0.3

    similarity_matrices = jax.random.uniform(
        k_mats, (num_matrices, batch, batch), jnp.float32, minval=-1.0, maxval=1.0)
    labels = jax.random.randint(k_labels, (batch,), 0, 4, dtype=jnp.int32)

    # Main path: everything fits in one lane-dense block.
    loss = cosine_similarity_loss(similarity_matrices, labels, alpha, beta)
    loss = jax.block_until_ready(loss)
    ref = jax.block_until_ready(_reference_loss(similarity_matrices, labels, alpha, beta))
    np.testing.assert_allclose(np.asarray(loss), np.asarray(ref), rtol=1e-5, atol=1e-5)

    # Exercise the tiled / padded path (multi-group + column tiles) with a tiny budget.
    k2_m, k2_l = jax.random.split(jax.random.PRNGKey(0), 2)
    sim2 = jax.random.uniform(k2_m, (9, batch, batch), jnp.float32, minval=-1.0, maxval=1.0)
    lab2 = jax.random.randint(k2_l, (batch,), 0, 4, dtype=jnp.int32)
    loss2 = jax.block_until_ready(
        cosine_similarity_loss(sim2, lab2, alpha, beta, target_block_bytes=1024))
    ref2 = jax.block_until_ready(_reference_loss(sim2, lab2, alpha, beta))
    np.testing.assert_allclose(np.asarray(loss2), np.asarray(ref2), rtol=1e-5, atol=1e-5)

    print("KERNEL_OK")
</pallas_src>

<mosaic_0001>
module attributes {stable_mosaic.version = 11 : i64} {
  func.func @_cosine_loss_kernel(%arg0: i32, %arg1: i32, %arg2: memref<2x256xf32, #tpu.memory_space<vmem>>, %arg3: memref<3x256xf32, #tpu.memory_space<vmem>>, %arg4: memref<1x1xf32, #tpu.memory_space<vmem>>, %arg5: memref<3x1xf32, #tpu.memory_space<vmem>>, %arg6: memref<3x1xf32, #tpu.memory_space<vmem>>) attributes {dimension_semantics = [#tpu.dimension_semantics<parallel>, #tpu.dimension_semantics<arbitrary>], iteration_bounds = array<i64: 1, 1>, scalar_prefetch = 0 : i64, scratch_operands = 2 : i64, tpu.core_type = #tpu.core_type<tc>, window_params = [{transform_indices = @transform_0, window_bounds = array<i64: 2, 256>}, {transform_indices = @transform_1, window_bounds = array<i64: 3, 256>}, {transform_indices = @transform_2, window_bounds = array<i64: 1, 1>}]} {
    %c0_i32 = arith.constant 0 : i32
    %0 = arith.cmpi eq, %arg1, %c0_i32 : i32
    %1 = arith.extui %0 : i1 to i32
    %c0_i32_0 = arith.constant 0 : i32
    %2 = arith.cmpi ne, %1, %c0_i32_0 : i32
    scf.if %2 {
      %cst_15 = arith.constant 0.000000e+00 : f32
      %24 = vector.broadcast %cst_15 : f32 to vector<3x1xf32>
      %c0_16 = arith.constant 0 : index
      %c0_17 = arith.constant 0 : index
      %25 = vector.load %arg5[%c0_16, %c0_17] : memref<3x1xf32, #tpu.memory_space<vmem>>, vector<3x1xf32>
      tpu.vector_store %arg5[%c0_16, %c0_17], %24 {strides = array<i32>} : memref<3x1xf32, #tpu.memory_space<vmem>>, vector<3x1xf32>,
      %cst_18 = arith.constant 0.000000e+00 : f32
      %26 = vector.broadcast %cst_18 : f32 to vector<3x1xf32>
      %c0_19 = arith.constant 0 : index
      %c0_20 = arith.constant 0 : index
      %27 = vector.load %arg6[%c0_19, %c0_20] : memref<3x1xf32, #tpu.memory_space<vmem>>, vector<3x1xf32>
      tpu.vector_store %arg6[%c0_19, %c0_20], %26 {strides = array<i32>} : memref<3x1xf32, #tpu.memory_space<vmem>>, vector<3x1xf32>,
    } else {
    }
    %c0 = arith.constant 0 : index
    %c0_1 = arith.constant 0 : index
    %3 = vector.load %arg3[%c0, %c0_1] : memref<3x256xf32, #tpu.memory_space<vmem>>, vector<3x256xf32>
    %c0_2 = arith.constant 0 : index
    %c0_3 = arith.constant 0 : index
    %4 = vector.load %arg2[%c0_2, %c0_3] : memref<2x256xf32, #tpu.memory_space<vmem>>, vector<2x256xf32>
    %c0_4 = arith.constant 0 : index
    %c0_5 = arith.constant 0 : index
    %5 = vector.load %arg5[%c0_4, %c0_5] : memref<3x1xf32, #tpu.memory_space<vmem>>, vector<3x1xf32>
    %6 = vector.extract_strided_slice %4 {offsets = [0, 0], sizes = [1, 256], strides = [1, 1]} : vector<2x256xf32> to vector<1x256xf32>
    %7 = vector.broadcast %6 : vector<1x256xf32> to vector<3x256xf32>
    %8 = arith.mulf %3, %7 : vector<3x256xf32>
    %cst = arith.constant dense<0.000000e+00> : vector<3xf32>
    %9 = vector.multi_reduction <add>, %8, %cst [1] : vector<3x256xf32> to vector<3xf32>
    %10 = vector.shape_cast %9 : vector<3xf32> to vector<3x1xf32>
    %11 = arith.addf %5, %10 : vector<3x1xf32>
    %c0_6 = arith.constant 0 : index
    %c0_7 = arith.constant 0 : index
    %12 = vector.load %arg5[%c0_6, %c0_7] : memref<3x1xf32, #tpu.memory_space<vmem>>, vector<3x1xf32>
    tpu.vector_store %arg5[%c0_6, %c0_7], %11 {strides = array<i32>} : memref<3x1xf32, #tpu.memory_space<vmem>>, vector<3x1xf32>,
    %c0_8 = arith.constant 0 : index
    %c0_9 = arith.constant 0 : index
    %13 = vector.load %arg6[%c0_8, %c0_9] : memref<3x1xf32, #tpu.memory_space<vmem>>, vector<3x1xf32>
    %14 = vector.extract_strided_slice %4 {offsets = [1, 0], sizes = [1, 256], strides = [1, 1]} : vector<2x256xf32> to vector<1x256xf32>
    %15 = vector.broadcast %14 : vector<1x256xf32> to vector<3x256xf32>
    %16 = arith.mulf %3, %15 : vector<3x256xf32>
    %cst_10 = arith.constant dense<0.000000e+00> : vector<3xf32>
    %17 = vector.multi_reduction <add>, %16, %cst_10 [1] : vector<3x256xf32> to vector<3xf32>
    %18 = vector.shape_cast %17 : vector<3xf32> to vector<3x1xf32>
    %19 = arith.addf %13, %18 : vector<3x1xf32>
    %c0_11 = arith.constant 0 : index
    %c0_12 = arith.constant 0 : index
    %20 = vector.load %arg6[%c0_11, %c0_12] : memref<3x1xf32, #tpu.memory_space<vmem>>, vector<3x1xf32>
    tpu.vector_store %arg6[%c0_11, %c0_12], %19 {strides = array<i32>} : memref<3x1xf32, #tpu.memory_space<vmem>>, vector<3x1xf32>,
    %c0_i32_13 = arith.constant 0 : i32
    %21 = arith.cmpi eq, %arg1, %c0_i32_13 : i32
    %22 = arith.extui %21 : i1 to i32
    %c0_i32_14 = arith.constant 0 : i32
    %23 = arith.cmpi ne, %22, %c0_i32_14 : i32
    scf.if %23 {
      %c0_15 = arith.constant 0 : index
      %c0_16 = arith.constant 0 : index
      %24 = vector.load %arg5[%c0_15, %c0_16] : memref<3x1xf32, #tpu.memory_space<vmem>>, vector<3x1xf32>
      %c0_17 = arith.constant 0 : index
      %c0_18 = arith.constant 0 : index
      %25 = vector.load %arg6[%c0_17, %c0_18] : memref<3x1xf32, #tpu.memory_space<vmem>>, vector<3x1xf32>
      %26 = arith.cmpf one, %25, %25 : vector<3x1xf32>
      %27 = arith.addf %24, %25 : vector<3x1xf32>
      %28 = arith.select %26, %24, %27 : vector<3x1xi1>, vector<3x1xf32>
      %cst_19 = arith.constant 0.000000e+00 : f32
      %29 = vector.broadcast %cst_19 : f32 to vector<3x1xf32>
      %30 = arith.maximumf %28, %29 : vector<3x1xf32>
      %cst_20 = arith.constant dense<0.000000e+00> : vector<1xf32>
      %31 = vector.multi_reduction <add>, %30, %cst_20 [0] : vector<3x1xf32> to vector<1xf32>
      %32 = vector.shape_cast %31 : vector<1xf32> to vector<1x1xf32>
      %c0_21 = arith.constant 0 : index
      %c0_22 = arith.constant 0 : index
      %33 = vector.load %arg4[%c0_21, %c0_22] : memref<1x1xf32, #tpu.memory_space<vmem>>, vector<1x1xf32>
      tpu.vector_store %arg4[%c0_21, %c0_22], %32 {strides = array<i32>} : memref<1x1xf32, #tpu.memory_space<vmem>>, vector<1x1xf32>,
    } else {
    }
    return
  }
  func.func @transform_0(%arg0: i32, %arg1: i32) -> (i32, i32) {
    %c0_i32 = arith.constant 0 : i32
    %c0_i32_0 = arith.constant 0 : i32
    return %c0_i32, %arg1 : i32, i32
  }
  func.func @transform_1(%arg0: i32, %arg1: i32) -> (i32, i32) {
    %c0_i32 = arith.constant 0 : i32
    return %arg0, %arg1 : i32, i32
  }
  func.func @transform_2(%arg0: i32, %arg1: i32) -> (i32, i32) {
    %c0_i32 = arith.constant 0 : i32
    %c0_i32_0 = arith.constant 0 : i32
    return %arg0, %c0_i32 : i32, i32
  }
}

</mosaic_0001>

<bundles_post_ra>
// kernel: tpu_custom_call.1
= control target key start
LH: loop header
LB: loop body
LE: loop exit
PB: predicated region body
PF: predicated region fallthrough
CT: control target
= control target key end

     0   :  { %7 = vsyncpa [#allocation5], 0  ;;  %s253_s0 = inlined_call_operand.hbm [shape: f32[2,256], index: 0, kind: input, shape index: {}]   ;;  %s254_s1 = inlined_call_operand.hbm [shape: f32[3,256], index: 1, kind: input, shape index: {}]   ;;  %s255_s2 = inlined_call_operand.hbm [shape: f32[1,1], index: 2, kind: output, shape index: {}]  }
   0x1   :  { %8 = vsyncpa [#allocation8], 0 }
   0x2   :  { %9 = vsyncpa [#allocation6], 0  ;;  %s220_s9 = smov [#allocation4]   ;;  %s221_s11 = smov [#allocation7]  }
   0x3   :  { %s16_s10 = sshll.u32 %s220_s9, 4  ;;  %s26_s12 = sshll.u32 %s221_s11, 4  ;;  %s17_s10 = int_to_ptr.vmem [resolvable:$true] %s16_s10  ;;  %s27_s12 = int_to_ptr.vmem [resolvable:$true] %s26_s12 }
   0x4   :  { %s162_s13 = scalar_lea.vmem %s17_s10, 64  ;;  %p167_p1 = scmp.lt.s32.totalorder %s17_s10, %s17_s10 }
   0x5   :  { %p163_p0 = scmp.ne.s32.totalorder %s17_s10, %s162_s13  ;;  %p168_p2 = scmp.lt.s32.totalorder %s162_s13, %s162_s13 }
   0x7   :  { %p169_p3 = por %p168_p2, %p167_p1 }
   0x9   :  { %p170_p4 = pnand %p169_p3, %p163_p0 }
   0xb   :  { %173 = shalt.err (!%p170_p4)
}
   0xc   :  { %19 = dma.hbm_to_vmem [thread:$0]  %s253_s0, 64, %s17_s10, [#allocation5]  }
   0xd   :  { %s182_s16 = scalar_lea.vmem %s27_s12, 128  ;;  %p187_p6 = scmp.lt.s32.totalorder %s27_s12, %s27_s12 }
   0xe   :  { %p183_p5 = scmp.ne.s32.totalorder %s27_s12, %s182_s16  ;;  %p188_p7 = scmp.lt.s32.totalorder %s182_s16, %s182_s16 }
  0x10   :  { %p189_p8 = por %p188_p7, %p187_p6 }
  0x12   :  { %p190_p9 = pnand %p189_p8, %p183_p5 }
  0x14   :  { %193 = shalt.err (!%p190_p9)
}
  0x15   :  { %29 = dma.hbm_to_vmem [thread:$0]  %s254_s1, 128, %s27_s12, [#allocation8]  }
  0x16   :  { %214 = dma.done.wait [#allocation5], 64  }
  0x17   :  { %215 = vsyncadd [#allocation5], 4294967232 }
  0x18   :  { %216 = dma.done.wait [#allocation8], 128  }
  0x19   :  { %217 = vsyncadd [#allocation8], 4294967168  ;;  %v47_v0 = vlaneseq  ;;  %vm40_vm0 = vcmask 2048   ;;  %v222_v1 = vmov 0.0   ;;  %v44_v7 = vld [vmem:[#allocation4] sm:$0xf] }
  0x1a   :  { %41 = vst.msk [vmem:[#allocation2] sm:$0x7] %vm40_vm0, %v222_v1  ;;  %42 = vst.msk [vmem:[#allocation3] sm:$0x7] %vm40_vm0, %v222_v1  ;;  %v43_v16 = vld [vmem:[#allocation7] sm:$0x77] }
  0x1b   :  { %v48_v2 = vshrl.u32 %v47_v0, 7  ;;  %vm73_vm1 = vcmask 1042432   ;;  %s223_s0 = smov [#allocation9]   ;;  %vm132_vm3 = vcmask 0  }
  0x1c   :  { %s140_s1 = sshll.u32 %s223_s0, 4  ;;  %s141_s1 = int_to_ptr.vmem [resolvable:$true] %s140_s1 }
  0x1d   :  { %v49_v3 = vsub.s32 0, %v48_v2  ;;  %v53_v4 = vsub.s32 2, %v48_v2  ;;  %v85_v5 = vsub.s32 1, %v48_v2  ;;  %v89_v6 = vsub.s32 3, %v48_v2  ;;  %s194_s19 = scalar_lea.vmem %s141_s1, 16  ;;  %s198_s20 = scalar_lea.vmem %s141_s1, 32 }
  0x1e   :  { %p195_p10 = scmp.ne.s32.totalorder %s141_s1, %s194_s19  ;;  %p199_p11 = scmp.lt.s32.totalorder %s141_s1, %s141_s1 }
  0x1f   :  { %v50_v8 = vrot.slane %v44_v7, %v49_v3  ;;  %v54_v9 = vrot.slane %v44_v7, %v53_v4  ;;  %v86_v10 = vrot.slane %v44_v7, %v85_v5  ;;  %v90_v11 = vrot.slane %v44_v7, %v89_v6  ;;  %p200_p12 = scmp.lt.s32.totalorder %s198_s20, %s194_s19 }
  0x21   :  { %v60_v12 = vrot.slane %v50_v8, %v49_v3  ;;  %v64_v13 = vrot.slane %v54_v9, %v49_v3  ;;  %v96_v14 = vrot.slane %v86_v10, %v85_v5  ;;  %v100_v15 = vrot.slane %v90_v11, %v85_v5  ;;  %v45_v29 = vld [vmem:[#allocation2] sm:$0x7]  ;;  %v82_v32 = vld [vmem:[#allocation3] sm:$0x7]  ;;  %p201_p13 = por %p200_p12, %p199_p11 }
  0x23   :  { %v67_v17 = vcombine.low %v60_v12, %v64_v13  ;;  %v103_v18 = vcombine.low %v96_v14, %v100_v15  ;;  %p202_p0 = pnand %p201_p13, %p195_p10 }
  0x25   :  { %v69_v19 = vmul.f32 %v67_v17, %v43_v16  ;;  %v105_v20 = vmul.f32 %v103_v18, %v43_v16 }
  0x27   :  { %v71_v21 = vcombine.high %v69_v19, %v69_v19  ;;  %v74_v22 = vsel %vm73_vm1, %v69_v19, 0.0  ;;  %v107_v23 = vcombine.high %v105_v20, %v105_v20  ;;  %v109_v25 = vsel %vm73_vm1, %v105_v20, 0.0 }
  0x29   :  { %v75_v24 = vsel %vm73_vm1, %v71_v21, 0.0  ;;  %v110_v26 = vsel %vm73_vm1, %v107_v23, 0.0 }
  0x2a   :  { %v76_v27 = vadd.f32 %v75_v24, %v74_v22  ;;  %v111_v28 = vadd.f32 %v110_v26, %v109_v25 }
  0x2c   :  { %77 = vadd.xlane.f32.xlu0 %v76_v27 }
  0x30   :  { %112 = vadd.xlane.f32.xlu0 %v111_v28 }
  0xb5   :  { %v78_v30 = vpop.xlane.xlu0 %77 }
  0xb6   :  { %v79_v31 = vadd.f32 %v78_v30, %v45_v29 }
  0xb8   :  { %81 = vst.msk [vmem:[#allocation2] sm:$0x7] %vm40_vm0, %v79_v31 }
  0xb9   :  { %v113_v33 = vpop.xlane.xlu0 %112 }
  0xba   :  { %v114_v34 = vadd.f32 %v113_v33, %v82_v32 }
  0xbc   :  { %115 = vst.msk [vmem:[#allocation3] sm:$0x7] %vm40_vm0, %v114_v34 }
  0xbf   :  { %v119_v35 = vld [vmem:[#allocation2] sm:$0x7] }
  0xc3   :  { %v120_v36 = vld [vmem:[#allocation3] sm:$0x7] }
  0xc4   :  { %vm121_vm2 = vcmp.ne.f32.partialorder %v120_v36, %v120_v36  ;;  %v122_v37 = vadd.f32 %v120_v36, %v119_v35 }
  0xc6   :  { %v123_v38 = vsel %vm121_vm2, %v119_v35, %v122_v37 }
  0xc7   :  { %v124_v39 = vmax.f32 %v123_v38, 0.0 }
  0xc9   :  { %v125_v40 = vsel %vm40_vm0, %v124_v39, 0.0 }
  0xca   :  { %v126_v41 = vrot.slane %v125_v40, 4 }
  0xcc   :  { %v127_v42 = vadd.f32 %v126_v41, %v125_v40 }
  0xce   :  { %v128_v43 = vrot.slane %v127_v42, 2 }
  0xd0   :  { %v129_v44 = vadd.f32 %v128_v43, %v127_v42 }
  0xd2   :  { %v130_v45 = vrot.slane %v129_v44, 1 }
  0xd4   :  { %v131_v46 = vadd.f32 %v130_v45, %v129_v44 }
  0xd6   :  { %133 = vst.msk [vmem:[#allocation9] sm:$0x1] %vm132_vm3, %v131_v46 }
  0xd7   :  { %205 = shalt.err (!%p202_p0)
}
  0xd8   :  { %143 = dma.vmem_to_hbm [thread:$0]  %s141_s1, 16, %s255_s2, [#allocation6]  }
  0xd9   :  { %218 = dma.done.wait [#allocation6], 16  }
  0xda   :  { %219 = vsyncadd [#allocation6], 4294967280 }
  0xdb   :  { %147 = vsyncpa [#allocation5], 1 }
  0xdc   :  { %148 = vsyncpa [#allocation8], 1 }
  0xdd   :  { %149 = vsyncpa [#allocation6], 1 }

</bundles_post_ra>
